<compile_context>
chip_gen: v7x
topology: tpu7x:2x2x1
jax: 0.10.0
libtpu: 0.0.40
codegen_flags: <defaults>
</compile_context>

<pallas_src>
import jax
import jax.numpy as jnp
from jax.experimental import pallas as pl
from jax.experimental.pallas import tpu as pltpu


def _round_up(n, m):
    return ((n + m - 1) // m) * m


# ----------------------------------------------------------------------------
# Kernel: one fused MXU matmul + VPU/EUP gate math.
# ----------------------------------------------------------------------------
def gru221_kernel(inp_ref, w_ref, b_ref, hbar_ref, out_ref):
    Hp = out_ref.shape[-1]
    # (bb, Dp) @ (Dp, 4*Hp) -> (bb, 4*Hp), f32 accumulation on the MXU.
    g = jnp.dot(inp_ref[...], w_ref[...],
                preferred_element_type=jnp.float32) + b_ref[...]
    # Gate blocks live at 128-aligned lane offsets -> plain vreg selections.
    r = jax.nn.sigmoid(g[:, 0 * Hp:1 * Hp])                        # wir(x)+whr(h)
    z = jax.nn.sigmoid(g[:, 1 * Hp:2 * Hp])                        # wiz(x)+whz(h)
    n = jnp.tanh(g[:, 2 * Hp:3 * Hp] + r * g[:, 3 * Hp:4 * Hp])    # win(x)+r*whn(h)
    out = (1.0 - z) * n + z * hbar_ref[...]                        # hbar = (h1+h2)/2
    out_ref[...] = out.astype(out_ref.dtype)


# ----------------------------------------------------------------------------
# Wrapper
# ----------------------------------------------------------------------------
@jax.jit
def gru221_forward(x, h1, h2, w_packed, b_packed):
    """x: (B, 1, I), h1/h2: (B, 1, H), packed params -> (B, 1, H)."""
    B, S, I = x.shape
    H = h1.shape[-1]
    assert S == 1, "GRU221 is used with seq length 1"
    Dp, W4 = w_packed.shape
    Hp = W4 // 4
    dtype = x.dtype

    # Batch (sublane) padding / tiling.
    Bp = _round_up(B, 8)
    block_b = Bp if Bp <= 512 else 512
    Bp = _round_up(Bp, block_b)

    x2 = x.reshape(B, I)
    h1_2 = h1.reshape(B, H)
    h2_2 = h2.reshape(B, H)

    # Packed activations [x | h1 | h2], zero-padded to (Bp, Dp).
    feat = jnp.concatenate([x2, h1_2, h2_2], axis=-1)              # (B, I + 2H)
    inp = jnp.zeros((Bp, Dp), dtype).at[:B, :I + 2 * H].set(feat)
    # hbar = (h1 + h2) / 2, zero-padded to a lane-dense (Bp, Hp) tile.
    hbar = jnp.zeros((Bp, Hp), dtype).at[:B, :H].set(0.5 * (h1_2 + h2_2))

    grid = (Bp // block_b,)
    out = pl.pallas_call(
        gru221_kernel,
        out_shape=jax.ShapeDtypeStruct((Bp, Hp), dtype),
        grid_spec=pltpu.PrefetchScalarGridSpec(
            num_scalar_prefetch=0,
            grid=grid,
            in_specs=[
                pl.BlockSpec((block_b, Dp), lambda i: (i, 0)),   # activations
                pl.BlockSpec((Dp, 4 * Hp), lambda i: (0, 0)),    # weights (resident)
                pl.BlockSpec((1, 4 * Hp), lambda i: (0, 0)),     # biases  (resident)
                pl.BlockSpec((block_b, Hp), lambda i: (i, 0)),   # hbar
            ],
            out_specs=pl.BlockSpec((block_b, Hp), lambda i: (i, 0)),
        ),
        compiler_params=pltpu.CompilerParams(
            dimension_semantics=("parallel",)),
    )(inp, w_packed, b_packed, hbar)

    return out[:B, :H].reshape(B, 1, H)


# ----------------------------------------------------------------------------
# Parameter init (matches torch init) + wrapper-side packing.
# ----------------------------------------------------------------------------
def xavier_uniform(key, out_features, in_features, dtype=jnp.float32):
    # torch.nn.init.xavier_uniform_ bound for a (out, in) weight.
    bound = (6.0 / (in_features + out_features)) ** 0.5
    return jax.random.uniform(key, (out_features, in_features), dtype,
                              minval=-bound, maxval=bound)


def linear_bias(key, in_features, out_features, dtype=jnp.float32):
    # torch.nn.Linear default bias init: U(-1/sqrt(in), 1/sqrt(in)).
    bound = 1.0 / (in_features ** 0.5)
    return jax.random.uniform(key, (1, out_features), dtype,
                              minval=-bound, maxval=bound)


def init_gru221_params(key, input_size, hidden_size, dtype=jnp.float32):
    names = ["wir", "whr", "wiz", "whz", "win", "whn"]
    in_sizes = {
        "wir": input_size, "wiz": input_size, "win": input_size,
        "whr": 2 * hidden_size, "whz": 2 * hidden_size, "whn": 2 * hidden_size,
    }
    params = {}
    keys = jax.random.split(key, 2 * len(names))
    for i, name in enumerate(names):
        w = xavier_uniform(keys[2 * i], hidden_size, in_sizes[name], dtype)
        b = linear_bias(keys[2 * i + 1], in_sizes[name], hidden_size, dtype)
        params[name + "_w"] = jnp.asarray(w.T)   # (in, out) for x @ W
        params[name + "_b"] = b                  # (1, out)
    return params


def pack_gru221_params(params, input_size, hidden_size):
    """Pack the six Linear layers into one weight slab + one bias slab.

    Weight (Dp, 4*Hp), gate blocks at 128-aligned column offsets:
      cols [0*Hp, .. +H): rows[0:I]=Wir, rows[I:I+2H]=Whr  -> r pre-activation
      cols [1*Hp, .. +H): rows[0:I]=Wiz, rows[I:I+2H]=Whz  -> z pre-activation
      cols [2*Hp, .. +H): rows[0:I]=Win                    -> win(x)
      cols [3*Hp, .. +H): rows[I:I+2H]=Whn                 -> whn(h)
    Bias (1, 4*Hp): [bir+bhr | biz+bhz | bin | bhn], same column blocks.
    Packing happens once, outside the per-step forward.
    """
    I, H = input_size, hidden_size
    Hp = _round_up(H, 128)
    Dp = _round_up(I + 2 * H, 128)
    dtype = params["wir_w"].dtype

    W = jnp.zeros((Dp, 4 * Hp), dtype)
    W = W.at[0:I, 0 * Hp:0 * Hp + H].set(params["wir_w"])
    W = W.at[I:I + 2 * H, 0 * Hp:0 * Hp + H].set(params["whr_w"])
    W = W.at[0:I, 1 * Hp:1 * Hp + H].set(params["wiz_w"])
    W = W.at[I:I + 2 * H, 1 * Hp:1 * Hp + H].set(params["whz_w"])
    W = W.at[0:I, 2 * Hp:2 * Hp + H].set(params["win_w"])
    W = W.at[I:I + 2 * H, 3 * Hp:3 * Hp + H].set(params["whn_w"])

    b = jnp.zeros((1, 4 * Hp), dtype)
    b = b.at[:, 0 * Hp:0 * Hp + H].set(params["wir_b"] + params["whr_b"])
    b = b.at[:, 1 * Hp:1 * Hp + H].set(params["wiz_b"] + params["whz_b"])
    b = b.at[:, 2 * Hp:2 * Hp + H].set(params["win_b"])
    b = b.at[:, 3 * Hp:3 * Hp + H].set(params["whn_b"])
    return W, b


# ----------------------------------------------------------------------------
# Pure-JAX reference mirroring the PyTorch forward (ground truth).
# ----------------------------------------------------------------------------
def gru221_reference(x, h1, h2, params):
    def lin(inp, w, b):
        return inp @ w + b
    h = jnp.concatenate([h1, h2], axis=2)
    r = jax.nn.sigmoid(lin(x, params["wir_w"], params["wir_b"]) +
                       lin(h, params["whr_w"], params["whr_b"]))
    z = jax.nn.sigmoid(lin(x, params["wiz_w"], params["wiz_b"]) +
                       lin(h, params["whz_w"], params["whz_b"]))
    n = jnp.tanh(lin(x, params["win_w"], params["win_b"]) +
                 r * lin(h, params["whn_w"], params["whn_b"]))
    return (1 - z) * n + z / 2 * h1 + z / 2 * h2


if __name__ == "__main__":
    B, S = 8, 1
    INPUT_SIZE, HIDDEN_SIZE = 32, 32

    key = jax.random.PRNGKey(0)
    kx, kh1, kh2, kp = jax.random.split(key, 4)

    x = jax.random.normal(kx, (B, S, INPUT_SIZE), jnp.float32)
    h1 = jax.random.normal(kh1, (B, S, HIDDEN_SIZE), jnp.float32)
    h2 = jax.random.normal(kh2, (B, S, HIDDEN_SIZE), jnp.float32)
    params = init_gru221_params(kp, INPUT_SIZE, HIDDEN_SIZE)

    # Pack the six Linear layers once (not per forward call).
    w_packed, b_packed = pack_gru221_params(params, INPUT_SIZE, HIDDEN_SIZE)

    out = gru221_forward(x, h1, h2, w_packed, b_packed)
    out = jax.block_until_ready(out)

    ref = gru221_reference(x, h1, h2, params)
    assert out.shape == (B, S, HIDDEN_SIZE)
    assert jnp.allclose(out, ref, atol=2e-5, rtol=2e-5), "mismatch vs reference"

    print("KERNEL_OK")
</pallas_src>

<mosaic_0001>
module attributes {stable_mosaic.version = 11 : i64} {
  func.func @gru221_kernel(%arg0: i32, %arg1: memref<8x128xf32, #tpu.memory_space<vmem>>, %arg2: memref<128x512xf32, #tpu.memory_space<vmem>>, %arg3: memref<1x512xf32, #tpu.memory_space<vmem>>, %arg4: memref<8x128xf32, #tpu.memory_space<vmem>>, %arg5: memref<8x128xf32, #tpu.memory_space<vmem>>) attributes {dimension_semantics = [#tpu.dimension_semantics<parallel>], iteration_bounds = array<i64: 1>, scalar_prefetch = 0 : i64, scratch_operands = 0 : i64, tpu.core_type = #tpu.core_type<tc>, window_params = [{transform_indices = @transform_0, window_bounds = array<i64: 8, 128>}, {pipeline_mode = #tpu.pipeline_mode<synchronous>, transform_indices = @transform_1, window_bounds = array<i64: 128, 512>}, {pipeline_mode = #tpu.pipeline_mode<synchronous>, transform_indices = @transform_2, window_bounds = array<i64: 1, 512>}, {transform_indices = @transform_3, window_bounds = array<i64: 8, 128>}, {transform_indices = @transform_4, window_bounds = array<i64: 8, 128>}]} {
    %c0 = arith.constant 0 : index
    %c0_0 = arith.constant 0 : index
    %0 = vector.load %arg1[%c0, %c0_0] : memref<8x128xf32, #tpu.memory_space<vmem>>, vector<8x128xf32>
    %c0_1 = arith.constant 0 : index
    %c0_2 = arith.constant 0 : index
    %1 = vector.load %arg2[%c0_1, %c0_2] : memref<128x512xf32, #tpu.memory_space<vmem>>, vector<128x512xf32>
    %cst = arith.constant dense<0.000000e+00> : vector<8x512xf32>
    %2 = tpu.matmul %0, %1, %cst {dimension_numbers = #tpu.dot_dimension_numbers<[1], [0], [0], [1], [0, 0, 1, 1], [], []>} : vector<8x128xf32>, vector<128x512xf32>, vector<8x512xf32> -> vector<8x512xf32>
    %c0_3 = arith.constant 0 : index
    %c0_4 = arith.constant 0 : index
    %3 = vector.load %arg3[%c0_3, %c0_4] : memref<1x512xf32, #tpu.memory_space<vmem>>, vector<1x512xf32>
    %4 = vector.broadcast %3 : vector<1x512xf32> to vector<8x512xf32>
    %5 = arith.addf %2, %4 : vector<8x512xf32>
    %6 = vector.extract_strided_slice %5 {offsets = [0, 0], sizes = [8, 128], strides = [1, 1]} : vector<8x512xf32> to vector<8x128xf32>
    %7 = arith.negf %6 : vector<8x128xf32>
    %8 = math.exp %7 : vector<8x128xf32>
    %cst_5 = arith.constant 1.000000e+00 : f32
    %9 = vector.broadcast %cst_5 : f32 to vector<8x128xf32>
    %10 = arith.addf %9, %8 : vector<8x128xf32>
    %11 = arith.divf %9, %10 : vector<8x128xf32>
    %12 = vector.extract_strided_slice %5 {offsets = [0, 128], sizes = [8, 128], strides = [1, 1]} : vector<8x512xf32> to vector<8x128xf32>
    %13 = arith.negf %12 : vector<8x128xf32>
    %14 = math.exp %13 : vector<8x128xf32>
    %cst_6 = arith.constant 1.000000e+00 : f32
    %15 = vector.broadcast %cst_6 : f32 to vector<8x128xf32>
    %16 = arith.addf %15, %14 : vector<8x128xf32>
    %17 = arith.divf %15, %16 : vector<8x128xf32>
    %18 = vector.extract_strided_slice %5 {offsets = [0, 256], sizes = [8, 128], strides = [1, 1]} : vector<8x512xf32> to vector<8x128xf32>
    %19 = vector.extract_strided_slice %5 {offsets = [0, 384], sizes = [8, 128], strides = [1, 1]} : vector<8x512xf32> to vector<8x128xf32>
    %20 = arith.mulf %11, %19 : vector<8x128xf32>
    %21 = arith.addf %18, %20 : vector<8x128xf32>
    %22 = math.tanh %21 : vector<8x128xf32>
    %cst_7 = arith.constant 1.000000e+00 : f32
    %23 = vector.broadcast %cst_7 : f32 to vector<8x128xf32>
    %24 = arith.subf %23, %17 : vector<8x128xf32>
    %25 = arith.mulf %24, %22 : vector<8x128xf32>
    %c0_8 = arith.constant 0 : index
    %c0_9 = arith.constant 0 : index
    %26 = vector.load %arg4[%c0_8, %c0_9] : memref<8x128xf32, #tpu.memory_space<vmem>>, vector<8x128xf32>
    %27 = arith.mulf %17, %26 : vector<8x128xf32>
    %28 = arith.addf %25, %27 : vector<8x128xf32>
    %c0_10 = arith.constant 0 : index
    %c0_11 = arith.constant 0 : index
    %29 = vector.load %arg5[%c0_10, %c0_11] : memref<8x128xf32, #tpu.memory_space<vmem>>, vector<8x128xf32>
    tpu.vector_store %arg5[%c0_10, %c0_11], %28 {strides = array<i32>} : memref<8x128xf32, #tpu.memory_space<vmem>>, vector<8x128xf32>,
    return
  }
  func.func @transform_0(%arg0: i32) -> (i32, i32) {
    %c0_i32 = arith.constant 0 : i32
    %c0_i32_0 = arith.constant 0 : i32
    return %arg0, %c0_i32 : i32, i32
  }
  func.func @transform_1(%arg0: i32) -> (i32, i32) {
    %c0_i32 = arith.constant 0 : i32
    %c0_i32_0 = arith.constant 0 : i32
    %c0_i32_1 = arith.constant 0 : i32
    return %c0_i32, %c0_i32_0 : i32, i32
  }
  func.func @transform_2(%arg0: i32) -> (i32, i32) {
    %c0_i32 = arith.constant 0 : i32
    %c0_i32_0 = arith.constant 0 : i32
    %c0_i32_1 = arith.constant 0 : i32
    return %c0_i32, %c0_i32_0 : i32, i32
  }
  func.func @transform_3(%arg0: i32) -> (i32, i32) {
    %c0_i32 = arith.constant 0 : i32
    %c0_i32_0 = arith.constant 0 : i32
    return %arg0, %c0_i32 : i32, i32
  }
  func.func @transform_4(%arg0: i32) -> (i32, i32) {
    %c0_i32 = arith.constant 0 : i32
    %c0_i32_0 = arith.constant 0 : i32
    return %arg0, %c0_i32 : i32, i32
  }
}

</mosaic_0001>

<bundles_post_ra>
// kernel: gru221_forward.1
= control target key start
LH: loop header
LB: loop body
LE: loop exit
PB: predicated region body
PF: predicated region fallthrough
CT: control target
= control target key end

     0   :  { %9 = vsyncpa [#allocation3], 0  ;;  %s489_s0 = inlined_call_operand.vmem [shape: f32[8,128], index: 0, kind: input, shape index: {}]   ;;  %s490_s1 = inlined_call_operand.hbm [shape: f32[128,512], index: 1, kind: input, shape index: {}]   ;;  %s491_s2 = inlined_call_operand.vmem [shape: f32[1,512], index: 2, kind: input, shape index: {}]   ;;  %s492_s3 = inlined_call_operand.vmem [shape: f32[8,128], index: 3, kind: input, shape index: {}]   ;;  %s493_s4 = inlined_call_operand.hbm [shape: f32[8,128], index: 4, kind: output, shape index: {}]  }
   0x1   :  { %10 = vsyncpa [#allocation4], 0  ;;  %s426_s15 = smov [#allocation2]   ;;  %s378_s19 = scalar_lea.hbm %s490_s1, 8192 }
   0x2   :  { %s18_s16 = sshll.u32 %s426_s15, 4  ;;  %p379_p0 = scmp.ne.s32.totalorder %s490_s1, %s378_s19  ;;  %s19_s16 = int_to_ptr.vmem [resolvable:$true] %s18_s16 }
   0x3   :  { %p382_p1 = scmp.lt.u32.totalorder %s378_s19, %s490_s1 }
   0x5   :  { %p384_p2 = pnand %p382_p1, %p379_p0 }
   0x7   :  { %387 = shalt.err (!%p384_p2)
}
   0x8   :  { %s388_s24 = scalar_lea.vmem %s19_s16, 8192  ;;  %p393_p4 = scmp.lt.s32.totalorder %s19_s16, %s19_s16 }
   0x9   :  { %p389_p3 = scmp.ne.s32.totalorder %s19_s16, %s388_s24  ;;  %p394_p5 = scmp.lt.s32.totalorder %s388_s24, %s388_s24 }
   0xb   :  { %p395_p6 = por %p394_p5, %p393_p4 }
   0xd   :  { %p396_p7 = pnand %p395_p6, %p389_p3 }
   0xf   :  { %399 = shalt.err (!%p396_p7)
}
  0x10   :  { %s427_s25 = smov 512   ;;  %s428_s26 = smov 32  }
  0x11   :  { %24 = dma.hbm_to_vmem [thread:$0]  %s490_s1, 8192, %s19_s16, [#allocation3], %s427_s25, %s427_s25, %s428_s26  }
  0x12   :  { %422 = dma.done.wait [#allocation3], 8192  }
  0x13   :  { %423 = vsyncadd [#allocation3], 4294959104  ;;  %v429_v0 = vmov 0.0   ;;  %v34_v1 = vld [vmem:[#allocation2 + $0x8] sm:$0xff]  ;;  %v33_v3 = vld [vmem:[#allocation2] sm:$0xff]  ;;  %s430_s6 = smov [#allocation5]  }
  0x14   :  { %183 = vmatprep.mubr.f32.mxu0 %v429_v0  ;;  %254 = vmatprep.mubr.f32.mxu1 %v429_v0  ;;  %v38_v2 = vld [vmem:[#allocation2 + $0x28] sm:$0xff]  ;;  %v37_v5 = vld [vmem:[#allocation2 + $0x20] sm:$0xff]  ;;  %v36_v22 = vld [vmem:[#allocation2 + $0x18] sm:$0xff]  ;;  %s288_s7 = sshll.u32 %s430_s6, 4  ;;  %s289_s7 = int_to_ptr.vmem [resolvable:$true] %s288_s7 }
  0x15   :  { %v299_v4 = vpack.c.bf16 %v38_v2, %v34_v1  ;;  %v42_v6 = vld [vmem:[#allocation2 + $0x48] sm:$0xff]  ;;  %v301_v8 = vpack.c.bf16 %v37_v5, %v33_v3  ;;  %v41_v10 = vld [vmem:[#allocation2 + $0x40] sm:$0xff]  ;;  %v40_v26 = vld [vmem:[#allocation2 + $0x38] sm:$0xff]  ;;  %s400_s8 = scalar_lea.vmem %s289_s7, 128  ;;  %p405_p9 = scmp.lt.s32.totalorder %s289_s7, %s289_s7 }
  0x16   :  { %v46_v7 = vld [vmem:[#allocation2 + $0x68] sm:$0xff]  ;;  %v45_v11 = vld [vmem:[#allocation2 + $0x60] sm:$0xff]  ;;  %v331_v28 = vpack.c.bf16 %v40_v26, %v36_v22  ;;  %v35_v29 = vld [vmem:[#allocation2 + $0x10] sm:$0xff]  ;;  %p401_p8 = scmp.ne.s32.totalorder %s289_s7, %s400_s8  ;;  %p406_p10 = scmp.lt.s32.totalorder %s400_s8, %s400_s8 }
  0x17   :  { %v303_v9 = vpack.c.bf16 %v46_v7, %v42_v6  ;;  %v50_v12 = vld [vmem:[#allocation2 + $0x88] sm:$0xff]  ;;  %300 = vmatprep.subr.bf16.mxu0 %v299_v4  ;;  %v305_v14 = vpack.c.bf16 %v45_v11, %v41_v10  ;;  %v49_v16 = vld [vmem:[#allocation2 + $0x80] sm:$0xff]  ;;  %v39_v30 = vld [vmem:[#allocation2 + $0x30] sm:$0xff] }
  0x18   :  { %v54_v13 = vld [vmem:[#allocation2 + $0xa8] sm:$0xff]  ;;  %302 = vmatpush1.bf16.msra.mxu0 %v301_v8  ;;  %v53_v17 = vld [vmem:[#allocation2 + $0xa0] sm:$0xff]  ;;  %v333_v32 = vpack.c.bf16 %v39_v30, %v35_v29  ;;  %v44_v33 = vld [vmem:[#allocation2 + $0x58] sm:$0xff]  ;;  %332 = vmatprep.subr.bf16.mxu1 %v331_v28  ;;  %p407_p11 = por %p406_p10, %p405_p9 }
  0x19   :  { %304 = vmatprep.subr.bf16.mxu0 %v303_v9  ;;  %v307_v15 = vpack.c.bf16 %v54_v13, %v50_v12  ;;  %v58_v18 = vld [vmem:[#allocation2 + $0xc8] sm:$0xff]  ;;  %v309_v20 = vpack.c.bf16 %v53_v17, %v49_v16  ;;  %v57_v21 = vld [vmem:[#allocation2 + $0xc0] sm:$0xff]  ;;  %v48_v34 = vld [vmem:[#allocation2 + $0x78] sm:$0xff] }
  0x1a   :  { %v62_v19 = vld [vmem:[#allocation2 + $0xe8] sm:$0xff]  ;;  %v61_v24 = vld [vmem:[#allocation2 + $0xe0] sm:$0xff]  ;;  %v335_v38 = vpack.c.bf16 %v48_v34, %v44_v33  ;;  %v43_v39 = vld [vmem:[#allocation2 + $0x50] sm:$0xff]  ;;  %334 = vmatpush1.bf16.msra.mxu1 %v333_v32  ;;  %v99_v34 = vlaneseq  ;;  %p408_p12 = pnand %p407_p11, %p401_p8 }
  0x1b   :  { %v311_v23 = vpack.c.bf16 %v62_v19, %v58_v18  ;;  %v66_v25 = vld [vmem:[#allocation2 + $0x108] sm:$0xff]  ;;  %v65_v31 = vld [vmem:[#allocation2 + $0x100] sm:$0xff]  ;;  %v313_v35 = vpack.c.bf16 %v61_v24, %v57_v21  ;;  %v47_v42 = vld [vmem:[#allocation2 + $0x70] sm:$0xff] }
  0x1c   :  { %306 = vmatpush1.bf16.msra.mxu0 %v305_v14  ;;  %v70_v27 = vld [vmem:[#allocation2 + $0x128] sm:$0xff]  ;;  %v69_v36 = vld [vmem:[#allocation2 + $0x120] sm:$0xff]  ;;  %v52_v43 = vld [vmem:[#allocation2 + $0x98] sm:$0xff]  ;;  %336 = vmatprep.subr.bf16.mxu1 %v335_v38  ;;  %v337_v44 = vpack.c.bf16 %v47_v42, %v43_v39 }
  0x1d   :  { %308 = vmatprep.subr.bf16.mxu0 %v307_v15  ;;  %v74_v37 = vld [vmem:[#allocation2 + $0x148] sm:$0xff]  ;;  %v315_v40 = vpack.c.bf16 %v70_v27, %v66_v25  ;;  %v56_v45 = vld [vmem:[#allocation2 + $0xb8] sm:$0xff]  ;;  %v51_v46 = vld [vmem:[#allocation2 + $0x90] sm:$0xff]  ;;  %v317_v51 = vpack.c.bf16 %v69_v36, %v65_v31 }
  0x1e   :  { %v78_v41 = vld [vmem:[#allocation2 + $0x168] sm:$0xff]  ;;  %v55_v47 = vld [vmem:[#allocation2 + $0xb0] sm:$0xff]  ;;  %v339_v48 = vpack.c.bf16 %v56_v45, %v52_v43  ;;  %v60_v49 = vld [vmem:[#allocation2 + $0xd8] sm:$0xff]  ;;  %338 = vmatpush1.bf16.msra.mxu1 %v337_v44 }
  0x1f   :  { %v64_v50 = vld [vmem:[#allocation2 + $0xf8] sm:$0xff]  ;;  %v319_v52 = vpack.c.bf16 %v78_v41, %v74_v37  ;;  %v73_v53 = vld [vmem:[#allocation2 + $0x140] sm:$0xff]  ;;  %v82_v55 = vld [vmem:[#allocation2 + $0x188] sm:$0xff]  ;;  %v341_v56 = vpack.c.bf16 %v55_v47, %v51_v46 }
  0x20   :  { %310 = vmatpush1.bf16.msra.mxu0 %v309_v20  ;;  %v77_v54 = vld [vmem:[#allocation2 + $0x160] sm:$0xff]  ;;  %v86_v57 = vld [vmem:[#allocation2 + $0x1a8] sm:$0xff]  ;;  %340 = vmatprep.subr.bf16.mxu1 %v339_v48  ;;  %v343_v58 = vpack.c.bf16 %v64_v50, %v60_v49  ;;  %v59_v59 = vld [vmem:[#allocation2 + $0xd0] sm:$0xff] }
  0x21   :  { %312 = vmatprep.subr.bf16.mxu0 %v311_v23  ;;  %v63_v60 = vld [vmem:[#allocation2 + $0xf0] sm:$0xff]  ;;  %v68_v61 = vld [vmem:[#allocation2 + $0x118] sm:$0xff]  ;;  %v321_v63 = vpack.c.bf16 %v77_v54, %v73_v53  ;;  %v323_v0 = vpack.c.bf16 %v86_v57, %v82_v55  ;;  %v81_v1 = vld [vmem:[#allocation2 + $0x180] sm:$0xff] }
  0x22   :  { %v72_v62 = vld [vmem:[#allocation2 + $0x138] sm:$0xff]  ;;  %v85_v2 = vld [vmem:[#allocation2 + $0x1a0] sm:$0xff]  ;;  %v90_v3 = vld [vmem:[#allocation2 + $0x1c8] sm:$0xff]  ;;  %342 = vmatpush1.bf16.msra.mxu1 %v341_v56  ;;  %v345_v4 = vpack.c.bf16 %v63_v60, %v59_v59 }
  0x23   :  { %v94_v5 = vld [vmem:[#allocation2 + $0x1e8] sm:$0xff]  ;;  %344 = vmatprep.subr.bf16.mxu1 %v343_v58  ;;  %v347_v6 = vpack.c.bf16 %v72_v62, %v68_v61  ;;  %v67_v7 = vld [vmem:[#allocation2 + $0x110] sm:$0xff]  ;;  %v76_v9 = vld [vmem:[#allocation2 + $0x158] sm:$0xff]  ;;  %v325_v11 = vpack.c.bf16 %v85_v2, %v81_v1 }
  0x24   :  { %314 = vmatpush1.bf16.msra.mxu0 %v313_v35  ;;  %v71_v8 = vld [vmem:[#allocation2 + $0x130] sm:$0xff]  ;;  %v80_v10 = vld [vmem:[#allocation2 + $0x178] sm:$0xff]  ;;  %v327_v12 = vpack.c.bf16 %v94_v5, %v90_v3  ;;  %v89_v13 = vld [vmem:[#allocation2 + $0x1c0] sm:$0xff]  ;;  %v100_v35 = vshrl.u32 %v99_v34, 7 }
  0x25   :  { %316 = vmatprep.subr.bf16.mxu0 %v315_v40  ;;  %v93_v14 = vld [vmem:[#allocation2 + $0x1e0] sm:$0xff]  ;;  %v349_v15 = vpack.c.bf16 %v71_v8, %v67_v7  ;;  %v351_v16 = vpack.c.bf16 %v80_v10, %v76_v9  ;;  %v75_v17 = vld [vmem:[#allocation2 + $0x150] sm:$0xff]  ;;  %v84_v19 = vld [vmem:[#allocation2 + $0x198] sm:$0xff] }
  0x26   :  { %346 = vmatpush1.bf16.msra.mxu1 %v345_v4  ;;  %v79_v18 = vld [vmem:[#allocation2 + $0x170] sm:$0xff]  ;;  %v88_v20 = vld [vmem:[#allocation2 + $0x1b8] sm:$0xff]  ;;  %v329_v21 = vpack.c.bf16 %v93_v14, %v89_v13  ;;  %v32_v28 = vld [vmem:[%s489_s0] sm:$0xff]  ;;  %v101_v36 = vsub.s32 0, %v100_v35  ;;  %v105_v38 = vsub.s32 1, %v100_v35 }
  0x27   :  { %348 = vmatprep.subr.bf16.mxu1 %v347_v6  ;;  %v353_v22 = vpack.c.bf16 %v79_v18, %v75_v17  ;;  %v355_v23 = vpack.c.bf16 %v88_v20, %v84_v19  ;;  %v83_v24 = vld [vmem:[#allocation2 + $0x190] sm:$0xff]  ;;  %v92_v26 = vld [vmem:[#allocation2 + $0x1d8] sm:$0xff]  ;;  %v97_v37 = vld [vmem:[%s491_s2] sm:$0xf] }
  0x28   :  { %318 = vmatpush1.bf16.msra.mxu0 %v317_v51  ;;  %v87_v25 = vld [vmem:[#allocation2 + $0x1b0] sm:$0xff]  ;;  %v96_v27 = vld [vmem:[#allocation2 + $0x1f8] sm:$0xff]  ;;  %v102_v39 = vrot.slane %v97_v37, %v101_v36  ;;  %v106_v41 = vrot.slane %v97_v37, %v105_v38  ;;  %v113_v51 = vsub.s32 3, %v100_v35 }
  0x29   :  { %320 = vmatprep.subr.bf16.mxu0 %v319_v52  ;;  %v357_v29 = vpack.c.bf16 %v87_v25, %v83_v24  ;;  %v359_v30 = vpack.c.bf16 %v96_v27, %v92_v26  ;;  %v91_v31 = vld [vmem:[#allocation2 + $0x1d0] sm:$0xff]  ;;  %v109_v52 = vsub.s32 2, %v100_v35 }
  0x2a   :  { %350 = vmatpush1.bf16.msra.mxu1 %v349_v15  ;;  %v95_v32 = vld [vmem:[#allocation2 + $0x1f0] sm:$0xff]  ;;  %v114_v53 = vrot.slane %v97_v37, %v113_v51 }
  0x2b   :  { %352 = vmatprep.subr.bf16.mxu1 %v351_v16  ;;  %v361_v33 = vpack.c.bf16 %v95_v32, %v91_v31  ;;  %v110_v56 = vrot.slane %v97_v37, %v109_v52 }
  0x2c   :  { %322 = vmatpush1.bf16.msra.mxu0 %v321_v63  ;;  %v278_v63 = vld [vmem:[%s492_s3] sm:$0xff] }
  0x2d   :  { %324 = vmatprep.subr.bf16.mxu0 %v323_v0 }
  0x2e   :  { %354 = vmatpush1.bf16.msra.mxu1 %v353_v22 }
  0x2f   :  { %356 = vmatprep.subr.bf16.mxu1 %v355_v23 }
  0x30   :  { %326 = vmatpush1.bf16.msra.mxu0 %v325_v11 }
  0x31   :  { %328 = vmatprep.subr.bf16.mxu0 %v327_v12 }
  0x32   :  { %358 = vmatpush1.bf16.msra.mxu1 %v357_v29 }
  0x33   :  { %360 = vmatprep.subr.bf16.mxu1 %v359_v30 }
  0x34   :  { %330 = vmatpush1.bf16.msra.mxu0 %v329_v21 }
  0x36   :  { %362 = vmatpush1.bf16.msra.mxu1 %v361_v33 }
  0x37   :  { %184 = vmatmul.mubr.f32.vlgmr.msra.gmra.mrb[0].mxu0 %v32_v28 }
  0x39   :  { %255 = vmatmul.mubr.f32.vlgmr.msra.gmra.mrb[0].mxu1 %v32_v28 }
 0x10a   :  { %v185_v40 = vpop.f32.mrb[0].mxu0 }
 0x10b   :  { %v186_v42 = vadd.f32 %v185_v40, %v102_v39  ;;  %v187_v43 = vpop.f32.mrb[1].mxu0 }
 0x10c   :  { %v188_v45 = vadd.f32 %v187_v43, %v106_v41  ;;  %v256_v47 = vpop.f32.mrb[0].mxu1 }
 0x10d   :  { %v297_v44 = vmul.f32 -1.442695, %v186_v42  ;;  %v258_v48 = vpop.f32.mrb[1].mxu1  ;;  %v257_v59 = vadd.f32 %v256_v47, %v110_v56 }
 0x10e   :  { %v298_v46 = vmul.f32 -1.442695, %v188_v45  ;;  %v259_v57 = vadd.f32 %v258_v48, %v114_v53 }
 0x10f   :  { %368 = vpow2.f32 %v297_v44 }
 0x110   :  { %370 = vpow2.f32 %v298_v46 }
 0x119   :  { %v369_v49 = vpop.eup %368 }
 0x11a   :  { %v264_v50 = vadd.f32 1.0, %v369_v49  ;;  %v371_v54 = vpop.eup %370 }
 0x11b   :  { %v270_v55 = vadd.f32 1.0, %v371_v54 }
 0x11c   :  { %372 = vrcp.f32 %v264_v50 }
 0x11d   :  { %374 = vrcp.f32 %v270_v55 }
 0x126   :  { %v373_v58 = vpop.eup %372 }
 0x127   :  { %v273_v60 = vmul.f32 %v373_v58, %v259_v57  ;;  %v375_v62 = vpop.eup %374 }
 0x128   :  { %v276_v0 = vsub.f32 1.0, %v375_v62  ;;  %v279_v3 = vmul.f32 %v375_v62, %v278_v63 }
 0x129   :  { %v274_v61 = vadd.f32 %v273_v60, %v257_v59 }
 0x12b   :  { %376 = vtanh.f32 %v274_v61 }
 0x135   :  { %v377_v1 = vpop.eup %376 }
 0x136   :  { %v277_v2 = vmul.f32 %v377_v1, %v276_v0 }
 0x138   :  { %v280_v4 = vadd.f32 %v279_v3, %v277_v2 }
 0x13a   :  { %281 = vst [vmem:[#allocation5] sm:$0xff] %v280_v4 }
 0x13b   :  { %411 = shalt.err (!%p408_p12)
}
 0x13c   :  { %s412_s3 = scalar_lea.hbm %s493_s4, 128 }
 0x13d   :  { %p413_p13 = scmp.ne.s32.totalorder %s493_s4, %s412_s3  ;;  %p416_p0 = scmp.lt.u32.totalorder %s412_s3, %s493_s4 }
 0x13f   :  { %p418_p1 = pnand %p416_p0, %p413_p13 }
 0x141   :  { %421 = shalt.err (!%p418_p1)
}
 0x142   :  { %291 = dma.vmem_to_hbm [thread:$0]  %s289_s7, 128, %s493_s4, [#allocation4]  }
 0x143   :  { %424 = dma.done.wait [#allocation4], 128  }
 0x144   :  { %425 = vsyncadd [#allocation4], 4294967168 }
 0x145   :  { %295 = vsyncpa [#allocation3], 1 }
 0x146   :  { %296 = vsyncpa [#allocation4], 1 }

</bundles_post_ra>
